<compile_context>
chip_gen: v7x
topology: tpu7x:2x2x1
jax: 0.10.0
libtpu: 0.0.40
codegen_flags: <defaults>
</compile_context>

<pallas_src>
import functools

import jax
import jax.numpy as jnp
from jax.experimental import pallas as pl
from jax.experimental.pallas import tpu as pltpu


def _normalize_kernel(x_ref, o_ref, *, power: float):
    # Single upcast pass for the reduction; all math in f32.
    x = x_ref[...].astype(jnp.float32)

    if power == 2.0:
        # Hot path: VPU multiply + row reduction + one sqrt per row.
        s = jnp.sum(x * x, axis=-1, keepdims=True)
        norm = jnp.sqrt(s)
    elif power == 1.0:
        norm = jnp.sum(x, axis=-1, keepdims=True)
    elif float(power).is_integer() and power > 0:
        # Sign-correct integer pow via repeated multiply (matches torch x.pow(int)).
        p = int(power)
        xp = x
        for _ in range(p - 1):
            xp = xp * x
        s = jnp.sum(xp, axis=-1, keepdims=True)
        # s ** (1/p) on the EUP; NaN for negative s with non-integer 1/p, like torch.
        norm = jnp.exp(jnp.log(s) * (1.0 / power))
    else:
        # Non-integer p: NaN for negative inputs, exactly like torch x.pow(p).
        s = jnp.sum(jnp.exp(jnp.log(x) * power), axis=-1, keepdims=True)
        norm = jnp.exp(jnp.log(s) * (1.0 / power))

    # Exact reciprocal: the previous approx EUP estimate broke 1e-5 parity with
    # PyTorch's exact divide.  One divide per (row, 1) column is fully hidden
    # under the memory-bound roofline.
    inv = 1.0 / (norm + 1e-07)

    # Re-read the input tile for the store so the full-tile f32 upcast used in
    # the reduction need not stay live (avoids a materialized f32 tile / vreg
    # spills for narrow dtypes); the extra per-vreg casts are free filler.
    o_ref[...] = (x_ref[...].astype(jnp.float32) * inv).astype(o_ref.dtype)


def _sublane_multiple(dtype) -> int:
    """Native sublane packing for the dtype: 8 (4B), 16 (2B), 32 (1B)."""
    itemsize = jnp.dtype(dtype).itemsize
    return max(8, 32 // max(1, itemsize))


def _vmem_budgets() -> tuple[int, int]:
    """(tile byte budget, vmem_limit_bytes), sized per TPU generation."""
    try:
        cap = int(pltpu.get_tpu_info().vmem_capacity_bytes)
    except Exception:
        cap = 64 << 20  # conservative: assume v7x-sized (64 MiB / TC) VMEM
    if cap >= (128 << 20):          # v5e / v6e: 128 MiB physical VMEM
        return 40 << 20, 96 << 20
    return 16 << 20, 48 << 20       # v7x: 64 MiB per TC (32 MiB scoped default)


def _pick_row_tile(B: int, D: int, dtype, budget_bytes: int) -> int:
    """Largest sublane-aligned row tile whose working set fits `budget_bytes`.

    Working set per row: double-buffered input + output tiles plus ~2 f32 rows
    for the in-kernel upcast passes.  Purely byte-based (no fixed row cap):
    bigger tiles just amortize the ~0.35 us per-step overhead of this
    streaming, HBM-bound kernel.
    """
    itemsize = jnp.dtype(dtype).itemsize
    sub = _sublane_multiple(dtype)
    per_row = 2 * 2 * D * itemsize + 2 * D * 4
    max_rows = max(sub, budget_bytes // max(1, per_row))
    tile = (max_rows // sub) * sub
    b_padded = ((B + sub - 1) // sub) * sub   # no point tiling past the batch
    tile = min(tile, b_padded)
    return max(tile, sub)


def normalize_ref(x: jax.Array, power: float = 2.0) -> jax.Array:
    """Pure-JAX reference mirroring the PyTorch forward."""
    xf = x.astype(jnp.float32)
    p = float(power)
    xp = xf ** int(p) if p.is_integer() else xf ** p
    norm = jnp.sum(xp, axis=1, keepdims=True) ** (1.0 / p)
    return (xf / (norm + 1e-07)).astype(x.dtype)


def normalize(x: jax.Array, power: float = 2.0, row_tile: int | None = None) -> jax.Array:
    """L-p normalize each row of a (B, D) array, matching the PyTorch module."""
    B, D = x.shape
    power = float(power)

    if D < 128:
        # Lane-sparse masked stores would dominate a standalone kernel here;
        # let XLA fuse this op into its neighbours instead.
        # TODO(synk): pack 128//D rows per lane-row + block-diagonal MXU
        # segmented reduction if a dedicated Pallas path is ever needed for tiny D.
        return normalize_ref(x, power)

    budget, vmem_limit = _vmem_budgets()
    if row_tile is None:
        row_tile = _pick_row_tile(B, D, x.dtype, budget)

    kernel = functools.partial(_normalize_kernel, power=power)

    return pl.pallas_call(
        kernel,
        out_shape=jax.ShapeDtypeStruct((B, D), x.dtype),
        grid_spec=pltpu.PrefetchScalarGridSpec(
            num_scalar_prefetch=0,
            # Ragged last block instead of jnp.pad + out[:B]: removes a full
            # extra HBM read+write pair when B % row_tile != 0.  Tail garbage
            # stays within its own row (per-row reduction) and out-of-bounds
            # writes are dropped by Pallas.
            grid=(pl.cdiv(B, row_tile),),
            # Full feature dim per block: the row reduction stays inside one
            # block, so there is no cross-block accumulation.
            in_specs=[pl.BlockSpec((row_tile, D), lambda i: (i, 0))],
            out_specs=pl.BlockSpec((row_tile, D), lambda i: (i, 0)),
        ),
        compiler_params=pltpu.CompilerParams(
            # TODO(synk): on v7x (2 TensorCores/chip) switch this axis to
            # pltpu.CORE_PARALLEL (gated on the detected chip) to split the
            # streaming loop across both cores; kept at "parallel" here for
            # portability across v5e/v6e/interpret runs.
            dimension_semantics=("parallel",),
            vmem_limit_bytes=vmem_limit,
        ),
    )(x)


if __name__ == "__main__":
    key = jax.random.PRNGKey(0)

    # Small feature head consistent with a contrastive-loss projection.
    B, D = 8, 128
    x = jax.random.normal(key, (B, D), dtype=jnp.float32)
    out = jax.block_until_ready(normalize(x, power=2.0))
    ref = normalize_ref(x, power=2.0)
    assert out.shape == (B, D) and out.dtype == x.dtype
    assert jnp.allclose(out, ref, atol=1e-5, rtol=1e-5)

    # Ragged last block: batch not a multiple of the (forced) row tile.
    B2, D2 = 13, 256
    x2 = jax.random.normal(jax.random.PRNGKey(1), (B2, D2), dtype=jnp.float32)
    out2 = jax.block_until_ready(normalize(x2, power=2.0, row_tile=8))
    ref2 = normalize_ref(x2, power=2.0)
    assert out2.shape == (B2, D2)
    assert jnp.allclose(out2, ref2, atol=1e-5, rtol=1e-5)

    # Even integer p != 2 exercises the sign-correct integer-pow path.
    out3 = jax.block_until_ready(normalize(x, power=4.0))
    ref3 = normalize_ref(x, power=4.0)
    assert jnp.allclose(out3, ref3, atol=1e-4, rtol=1e-4)

    # Tiny feature dim takes the XLA fallback but keeps module semantics.
    x4 = jax.random.normal(jax.random.PRNGKey(2), (8, 32), dtype=jnp.float32)
    out4 = jax.block_until_ready(normalize(x4, power=2.0))
    assert out4.shape == (8, 32)

    print("KERNEL_OK")
</pallas_src>

<mosaic_0001>
module attributes {stable_mosaic.version = 11 : i64} {
  func.func @_normalize_kernel(%arg0: i32, %arg1: memref<8x128xf32, #tpu.memory_space<vmem>>, %arg2: memref<8x128xf32, #tpu.memory_space<vmem>>) attributes {dimension_semantics = [#tpu.dimension_semantics<parallel>], iteration_bounds = array<i64: 1>, scalar_prefetch = 0 : i64, scratch_operands = 0 : i64, tpu.core_type = #tpu.core_type<tc>, window_params = [{transform_indices = @transform_0, window_bounds = array<i64: 8, 128>}, {transform_indices = @transform_1, window_bounds = array<i64: 8, 128>}]} {
    %c0 = arith.constant 0 : index
    %c0_0 = arith.constant 0 : index
    %0 = vector.load %arg1[%c0, %c0_0] : memref<8x128xf32, #tpu.memory_space<vmem>>, vector<8x128xf32>
    %1 = arith.mulf %0, %0 : vector<8x128xf32>
    %cst = arith.constant dense<0.000000e+00> : vector<8xf32>
    %2 = vector.multi_reduction <add>, %1, %cst [1] : vector<8x128xf32> to vector<8xf32>
    %3 = vector.shape_cast %2 : vector<8xf32> to vector<8x1xf32>
    %4 = math.sqrt %3 : vector<8x1xf32>
    %cst_1 = arith.constant 1.000000e-07 : f32
    %5 = vector.broadcast %cst_1 : f32 to vector<8x1xf32>
    %6 = arith.addf %4, %5 : vector<8x1xf32>
    %cst_2 = arith.constant 1.000000e+00 : f32
    %7 = vector.broadcast %cst_2 : f32 to vector<8x1xf32>
    %8 = arith.divf %7, %6 : vector<8x1xf32>
    %c0_3 = arith.constant 0 : index
    %c0_4 = arith.constant 0 : index
    %9 = vector.load %arg1[%c0_3, %c0_4] : memref<8x128xf32, #tpu.memory_space<vmem>>, vector<8x128xf32>
    %10 = vector.broadcast %8 : vector<8x1xf32> to vector<8x128xf32>
    %11 = arith.mulf %9, %10 : vector<8x128xf32>
    %c0_5 = arith.constant 0 : index
    %c0_6 = arith.constant 0 : index
    %12 = vector.load %arg2[%c0_5, %c0_6] : memref<8x128xf32, #tpu.memory_space<vmem>>, vector<8x128xf32>
    tpu.vector_store %arg2[%c0_5, %c0_6], %11 {strides = array<i32>} : memref<8x128xf32, #tpu.memory_space<vmem>>, vector<8x128xf32>,
    return
  }
  func.func @transform_0(%arg0: i32) -> (i32, i32) {
    %c0_i32 = arith.constant 0 : i32
    %c0_i32_0 = arith.constant 0 : i32
    return %arg0, %c0_i32 : i32, i32
  }
  func.func @transform_1(%arg0: i32) -> (i32, i32) {
    %c0_i32 = arith.constant 0 : i32
    %c0_i32_0 = arith.constant 0 : i32
    return %arg0, %c0_i32 : i32, i32
  }
}

</mosaic_0001>

<bundles_post_ra>
// kernel: tpu_custom_call.1
= control target key start
LH: loop header
LB: loop body
LE: loop exit
PB: predicated region body
PF: predicated region fallthrough
CT: control target
= control target key end

     0   :  { %6 = vsyncpa [#allocation3], 0  ;;  %s142_s0 = inlined_call_operand.hbm [shape: f32[8,128], index: 0, kind: input, shape index: {}]   ;;  %s143_s1 = inlined_call_operand.hbm [shape: f32[8,128], index: 1, kind: output, shape index: {}]  }
   0x1   :  { %7 = vsyncpa [#allocation4], 0  ;;  %s106_s6 = smov [#allocation2]   ;;  %s58_s10 = scalar_lea.hbm %s142_s0, 128 }
   0x2   :  { %s14_s7 = sshll.u32 %s106_s6, 4  ;;  %p59_p0 = scmp.ne.s32.totalorder %s142_s0, %s58_s10  ;;  %s15_s7 = int_to_ptr.vmem [resolvable:$true] %s14_s7 }
   0x3   :  { %p62_p1 = scmp.lt.u32.totalorder %s58_s10, %s142_s0 }
   0x5   :  { %p64_p2 = pnand %p62_p1, %p59_p0 }
   0x7   :  { %67 = shalt.err (!%p64_p2)
}
   0x8   :  { %s68_s15 = scalar_lea.vmem %s15_s7, 128  ;;  %p73_p4 = scmp.lt.s32.totalorder %s15_s7, %s15_s7 }
   0x9   :  { %p69_p3 = scmp.ne.s32.totalorder %s15_s7, %s68_s15  ;;  %p74_p5 = scmp.lt.s32.totalorder %s68_s15, %s68_s15 }
   0xb   :  { %p75_p6 = por %p74_p5, %p73_p4 }
   0xd   :  { %p76_p7 = pnand %p75_p6, %p69_p3 }
   0xf   :  { %79 = shalt.err (!%p76_p7)
}
  0x10   :  { %17 = dma.hbm_to_vmem [thread:$0]  %s142_s0, 128, %s15_s7, [#allocation3]  }
  0x11   :  { %102 = dma.done.wait [#allocation3], 128  }
  0x12   :  { %103 = vsyncadd [#allocation3], 4294967168  ;;  %v21_v0 = vld [vmem:[#allocation2] sm:$0xff]  ;;  %s107_s18 = smov [#allocation5]  }
  0x13   :  { %v22_v1 = vmul.f32 %v21_v0, %v21_v0  ;;  %s43_s19 = sshll.u32 %s107_s18, 4  ;;  %s44_s19 = int_to_ptr.vmem [resolvable:$true] %s43_s19 }
  0x14   :  { %s80_s0 = scalar_lea.vmem %s44_s19, 128  ;;  %p85_p9 = scmp.lt.s32.totalorder %s44_s19, %s44_s19 }
  0x15   :  { %23 = vadd.xlane.f32.xlu0 %v22_v1  ;;  %p81_p8 = scmp.ne.s32.totalorder %s44_s19, %s80_s0  ;;  %p86_p10 = scmp.lt.s32.totalorder %s80_s0, %s80_s0 }
  0x17   :  { %p87_p11 = por %p86_p10, %p85_p9 }
  0x19   :  { %p88_p12 = pnand %p87_p11, %p81_p8 }
  0xa2   :  { %v24_v2 = vpop.xlane.xlu0 %23 }
  0xa3   :  { %54 = vrsqrt.f32 %v24_v2  ;;  %vm27_vm0 = vcmp.eq.f32.partialorder %v24_v2, inf  ;;  %v30_v5 = vand.u32 2147483648, %v24_v2  ;;  %vm29_vm1 = vcmp.eq.f32.partialorder %v24_v2, 0.0 }
  0xad   :  { %v55_v3 = vpop.eup %54 }
  0xae   :  { %v26_v4 = vmul.f32 %v55_v3, %v24_v2 }
  0xb0   :  { %v28_v6 = vsel %vm27_vm0, %v24_v2, %v26_v4 }
  0xb1   :  { %v31_v7 = vsel %vm29_vm1, %v30_v5, %v28_v6 }
  0xb2   :  { %v32_v8 = vadd.f32 1e-07, %v31_v7 }
  0xb4   :  { %56 = vrcp.f32 %v32_v8 }
  0xbe   :  { %v57_v9 = vpop.eup %56 }
  0xbf   :  { %v35_v10 = vmul.f32 %v57_v9, %v21_v0 }
  0xc1   :  { %36 = vst [vmem:[#allocation5] sm:$0xff] %v35_v10 }
  0xc2   :  { %91 = shalt.err (!%p88_p12)
}
  0xc3   :  { %s92_s22 = scalar_lea.hbm %s143_s1, 128 }
  0xc4   :  { %p93_p13 = scmp.ne.s32.totalorder %s143_s1, %s92_s22  ;;  %p96_p0 = scmp.lt.u32.totalorder %s92_s22, %s143_s1 }
  0xc6   :  { %p98_p1 = pnand %p96_p0, %p93_p13 }
  0xc8   :  { %101 = shalt.err (!%p98_p1)
}
  0xc9   :  { %46 = dma.vmem_to_hbm [thread:$0]  %s44_s19, 128, %s143_s1, [#allocation4]  }
  0xca   :  { %104 = dma.done.wait [#allocation4], 128  }
  0xcb   :  { %105 = vsyncadd [#allocation4], 4294967168 }
  0xcc   :  { %50 = vsyncpa [#allocation3], 1 }
  0xcd   :  { %51 = vsyncpa [#allocation4], 1 }

</bundles_post_ra>
